<compile_context>
chip_gen: v6e
topology: v6e:2x2x1
jax: 0.10.0
libtpu: 0.0.40
codegen_flags: <defaults>
</compile_context>

<pallas_src>
import functools

import jax
import jax.numpy as jnp
from jax.experimental import pallas as pl
from jax.experimental.pallas import tpu as pltpu


def _continuous_lstm_kernel(
    x_ref, h_ref, c_ref, t_ref,                                # activations (batch-tiled)
    w_h_ref, w_x_ref, b_big_ref, wt1_ref, wf2_ref, bf2_ref,    # weights (VMEM-resident)
    h_pre_ref, c_out_ref, h_out_ref,                           # outputs (batch-tiled)
):
    H = c_ref.shape[-1]
    mm_dtype = w_h_ref.dtype            # bf16 matmul operands, f32 accumulation

    h = h_ref[...]                      # (TB, H)  f32
    c = c_ref[...]                      # (TB, H)  f32
    t = t_ref[...]                      # (TB, 1)  f32

    # --- MXU: one wide matmul per operand ---------------------------------------------------
    # zh = h @ [Wf1 | W_hh] + [bf1 | b]   -> (TB, 5H): cols [flow_pre (H) | gates i,f,g,o (4H)]
    # zx = x @ W_ih                       -> (TB, 4H): gate contributions from x
    zh = jnp.dot(h.astype(mm_dtype), w_h_ref[...],
                 preferred_element_type=jnp.float32) + b_big_ref[...]
    zx = jnp.dot(x_ref[...].astype(mm_dtype), w_x_ref[...],
                 preferred_element_type=jnp.float32)

    # --- odeint (ResNet neural flow): h_pre = h + t * g([h, t]) ------------------------------
    # time term is a VPU broadcast (not a K=1 MXU matmul)
    u = jnp.tanh(zh[:, :H] + t * wt1_ref[...])                                   # (TB, H)
    flow = jnp.dot(u.astype(mm_dtype), wf2_ref[...],
                   preferred_element_type=jnp.float32) + bf2_ref[...]
    h_pre_ref[...] = (h + t * flow).astype(h_pre_ref.dtype)

    # --- nn.LSTMCell on the ORIGINAL h (spec: lstm(x, (c, h))), gate order i, f, g, o --------
    g = zh[:, H:] + zx                                                           # (TB, 4H)
    i_g = jax.nn.sigmoid(g[:, 0 * H:1 * H])
    f_g = jax.nn.sigmoid(g[:, 1 * H:2 * H])
    g_g = jnp.tanh(g[:, 2 * H:3 * H])
    o_g = jax.nn.sigmoid(g[:, 3 * H:4 * H])

    c_new = f_g * c + i_g * g_g
    c_out_ref[...] = c_new.astype(c_out_ref.dtype)
    h_out_ref[...] = (o_g * jnp.tanh(c_new)).astype(h_out_ref.dtype)


def _nbytes(a):
    return a.size * jnp.dtype(a.dtype).itemsize


def continuous_lstm_forward(x, c, h, t, params, *, batch_tile=512):
    """x: (B, D); c, h: (B, H); t: (B,) or (B, 1). Returns (h_pre, c_new, h_new), each (B, H) f32."""
    B, D = x.shape
    H = c.shape[-1]
    if t.ndim == 1:
        t = t[:, None]

    x32 = x.astype(jnp.float32)
    c32 = c.astype(jnp.float32)
    h32 = h.astype(jnp.float32)
    t32 = t.astype(jnp.float32)

    # Batch tile: multiple of 8 sublanes; pad B up to a multiple of it (no-op when aligned).
    tb = min(batch_tile, B)
    tb = ((tb + 7) // 8) * 8
    Bp = int(pl.cdiv(B, tb)) * tb
    if Bp != B:
        pad = ((0, Bp - B), (0, 0))
        x32, c32, h32, t32 = (jnp.pad(a, pad) for a in (x32, c32, h32, t32))

    grid = (Bp // tb,)

    def act_spec(cols):
        return pl.BlockSpec((tb, cols), lambda i: (i, 0))

    def w_spec(a):
        return pl.BlockSpec(a.shape, lambda i: (0, 0))     # constant block -> stays VMEM-resident

    w_h, w_x = params["w_h"], params["w_x"]
    b_big, wt1, wf2, bf2 = params["b_big"], params["wt1"], params["wf2"], params["bf2"]

    in_specs = [
        act_spec(D), act_spec(H), act_spec(H), act_spec(1),
        w_spec(w_h), w_spec(w_x), w_spec(b_big), w_spec(wt1), w_spec(wf2), w_spec(bf2),
    ]
    out_specs = (act_spec(H), act_spec(H), act_spec(H))
    out_shape = tuple(jax.ShapeDtypeStruct((Bp, H), jnp.float32) for _ in range(3))

    # VMEM budget: weights (counted twice to be safe) + double-buffered activation/output tiles.
    w_bytes = sum(_nbytes(a) for a in (w_h, w_x, b_big, wt1, wf2, bf2))
    act_bytes = 4 * tb * (D + H + H + 1 + 3 * H)
    vmem_limit = int(min(max(2 * w_bytes + 2 * act_bytes + (4 << 20), 16 << 20), 64 << 20))

    h_pre, c_new, h_new = pl.pallas_call(
        _continuous_lstm_kernel,
        out_shape=out_shape,
        grid=grid,
        in_specs=in_specs,
        out_specs=out_specs,
        compiler_params=pltpu.CompilerParams(
            dimension_semantics=("parallel",),
            vmem_limit_bytes=vmem_limit,
        ),
    )(x32, h32, c32, t32, w_h, w_x, b_big, wt1, wf2, bf2)

    return h_pre[:B], c_new[:B], h_new[:B]


def init_params(key, dim, hidden_dim, dtype=jnp.bfloat16):
    """nn.LSTMCell-style init (U[-1/sqrt(H), 1/sqrt(H)]) + ResNet-flow parameters.

    Matmul weights stored in `dtype` (bf16 halves VMEM footprint, 2x MXU throughput);
    biases / the time row stay f32 (elementwise path is f32 everywhere).
    """
    ks = jax.random.split(key, 9)
    s = 1.0 / jnp.sqrt(hidden_dim)
    u = lambda k, shape: jax.random.uniform(k, shape, jnp.float32, -s, s)

    w_ih = u(ks[0], (dim, 4 * hidden_dim))
    w_hh = u(ks[1], (hidden_dim, 4 * hidden_dim))
    b = u(ks[2], (1, 4 * hidden_dim)) + u(ks[3], (1, 4 * hidden_dim))      # b_ih + b_hh
    wf1 = u(ks[4], (hidden_dim, hidden_dim))
    wt1 = u(ks[5], (1, hidden_dim))
    bf1 = u(ks[6], (1, hidden_dim))
    wf2 = u(ks[7], (hidden_dim, hidden_dim))
    bf2 = u(ks[8], (1, hidden_dim))

    # Fused h-weight: rows = h (H), cols = [flow_pre (H) | gates i,f,g,o (4H)].
    w_h = jnp.concatenate([wf1, w_hh], axis=1)          # (H, 5H)
    b_big = jnp.concatenate([bf1, b], axis=1)           # (1, 5H)

    return {
        "w_h": w_h.astype(dtype),
        "w_x": w_ih.astype(dtype),                      # (D, 4H)
        "b_big": b_big.astype(jnp.float32),
        "wt1": wt1.astype(jnp.float32),
        "wf2": wf2.astype(dtype),
        "bf2": bf2.astype(jnp.float32),
    }


def _reference(x, c, h, t, p):
    """Pure-JAX reference mirroring the kernel's mixed-precision policy."""
    if t.ndim == 1:
        t = t[:, None]
    H = c.shape[-1]
    mmdt = p["w_h"].dtype
    zh = jnp.dot(h.astype(mmdt), p["w_h"], preferred_element_type=jnp.float32) + p["b_big"]
    zx = jnp.dot(x.astype(mmdt), p["w_x"], preferred_element_type=jnp.float32)
    u = jnp.tanh(zh[:, :H] + t * p["wt1"])
    flow = jnp.dot(u.astype(mmdt), p["wf2"], preferred_element_type=jnp.float32) + p["bf2"]
    h_pre = h + t * flow
    g = zh[:, H:] + zx
    i_g = jax.nn.sigmoid(g[:, 0 * H:1 * H])
    f_g = jax.nn.sigmoid(g[:, 1 * H:2 * H])
    g_g = jnp.tanh(g[:, 2 * H:3 * H])
    o_g = jax.nn.sigmoid(g[:, 3 * H:4 * H])
    c_new = f_g * c + i_g * g_g
    h_new = o_g * jnp.tanh(c_new)
    return h_pre, c_new, h_new


if __name__ == "__main__":
    B, D, H = 8, 8, 128     # batch multiple of 8, hidden multiple of 128 (lane-dense)
    key = jax.random.PRNGKey(0)
    k_x, k_c, k_h, k_t, k_p = jax.random.split(key, 5)

    x = jax.random.normal(k_x, (B, D), jnp.float32)
    c = jax.random.normal(k_c, (B, H), jnp.float32)
    h = jax.random.normal(k_h, (B, H), jnp.float32)
    t = jax.random.uniform(k_t, (B,), jnp.float32)          # time gaps
    params = init_params(k_p, D, H, dtype=jnp.bfloat16)

    fwd = jax.jit(functools.partial(continuous_lstm_forward, batch_tile=512))
    h_pre, c_new, h_new = fwd(x, c, h, t, params)
    jax.block_until_ready((h_pre, c_new, h_new))

    # Tight check vs. a reference with the same mixed-precision policy.
    r_h_pre, r_c, r_h = _reference(x, c, h, t, params)
    assert jnp.allclose(h_pre, r_h_pre, atol=2e-4, rtol=2e-4), "h_pre mismatch"
    assert jnp.allclose(c_new, r_c, atol=2e-4, rtol=2e-4), "c mismatch"
    assert jnp.allclose(h_new, r_h, atol=2e-4, rtol=2e-4), "h mismatch"

    # Sanity check vs. full-f32 math (differences are only bf16 matmul-operand rounding).
    params_f32 = init_params(k_p, D, H, dtype=jnp.float32)
    f_h_pre, f_c, f_h = _reference(x, c, h, t, params_f32)
    assert jnp.allclose(h_pre, f_h_pre, atol=3e-2), "h_pre far from f32 reference"
    assert jnp.allclose(c_new, f_c, atol=3e-2), "c far from f32 reference"
    assert jnp.allclose(h_new, f_h, atol=3e-2), "h far from f32 reference"

    print("KERNEL_OK")
</pallas_src>

<mosaic_0001>
module attributes {stable_mosaic.version = 11 : i64} {
  func.func @_continuous_lstm_kernel(%arg0: i32, %arg1: memref<8x8xf32, #tpu.memory_space<vmem>>, %arg2: memref<8x128xf32, #tpu.memory_space<vmem>>, %arg3: memref<8x128xf32, #tpu.memory_space<vmem>>, %arg4: memref<8x1xf32, #tpu.memory_space<vmem>>, %arg5: memref<128x640xbf16, #tpu.memory_space<vmem>>, %arg6: memref<8x512xbf16, #tpu.memory_space<vmem>>, %arg7: memref<1x640xf32, #tpu.memory_space<vmem>>, %arg8: memref<1x128xf32, #tpu.memory_space<vmem>>, %arg9: memref<128x128xbf16, #tpu.memory_space<vmem>>, %arg10: memref<1x128xf32, #tpu.memory_space<vmem>>, %arg11: memref<8x128xf32, #tpu.memory_space<vmem>>, %arg12: memref<8x128xf32, #tpu.memory_space<vmem>>, %arg13: memref<8x128xf32, #tpu.memory_space<vmem>>) attributes {dimension_semantics = [#tpu.dimension_semantics<parallel>], iteration_bounds = array<i64: 1>, scalar_prefetch = 0 : i64, scratch_operands = 0 : i64, tpu.core_type = #tpu.core_type<tc>, window_params = [{transform_indices = @transform_0, window_bounds = array<i64: 8, 8>}, {transform_indices = @transform_1, window_bounds = array<i64: 8, 128>}, {transform_indices = @transform_2, window_bounds = array<i64: 8, 128>}, {transform_indices = @transform_3, window_bounds = array<i64: 8, 1>}, {pipeline_mode = #tpu.pipeline_mode<synchronous>, transform_indices = @transform_4, window_bounds = array<i64: 128, 640>}, {pipeline_mode = #tpu.pipeline_mode<synchronous>, transform_indices = @transform_5, window_bounds = array<i64: 8, 512>}, {pipeline_mode = #tpu.pipeline_mode<synchronous>, transform_indices = @transform_6, window_bounds = array<i64: 1, 640>}, {pipeline_mode = #tpu.pipeline_mode<synchronous>, transform_indices = @transform_7, window_bounds = array<i64: 1, 128>}, {pipeline_mode = #tpu.pipeline_mode<synchronous>, transform_indices = @transform_8, window_bounds = array<i64: 128, 128>}, {pipeline_mode = #tpu.pipeline_mode<synchronous>, transform_indices = @transform_9, window_bounds = array<i64: 1, 128>}, {transform_indices = @transform_10, window_bounds = array<i64: 8, 128>}, {transform_indices = @transform_11, window_bounds = array<i64: 8, 128>}, {transform_indices = @transform_12, window_bounds = array<i64: 8, 128>}]} {
    %c0 = arith.constant 0 : index
    %c0_0 = arith.constant 0 : index
    %0 = vector.load %arg2[%c0, %c0_0] : memref<8x128xf32, #tpu.memory_space<vmem>>, vector<8x128xf32>
    %c0_1 = arith.constant 0 : index
    %c0_2 = arith.constant 0 : index
    %1 = vector.load %arg3[%c0_1, %c0_2] : memref<8x128xf32, #tpu.memory_space<vmem>>, vector<8x128xf32>
    %c0_3 = arith.constant 0 : index
    %c0_4 = arith.constant 0 : index
    %2 = vector.load %arg4[%c0_3, %c0_4] : memref<8x1xf32, #tpu.memory_space<vmem>>, vector<8x1xf32>
    %3 = arith.truncf %0 : vector<8x128xf32> to vector<8x128xbf16>
    %c0_5 = arith.constant 0 : index
    %c0_6 = arith.constant 0 : index
    %4 = vector.load %arg5[%c0_5, %c0_6] : memref<128x640xbf16, #tpu.memory_space<vmem>>, vector<128x640xbf16>
    %cst = arith.constant dense<0.000000e+00> : vector<8x640xf32>
    %5 = tpu.matmul %3, %4, %cst {dimension_numbers = #tpu.dot_dimension_numbers<[1], [0], [0], [1], [0, 0, 1, 1], [], []>} : vector<8x128xbf16>, vector<128x640xbf16>, vector<8x640xf32> -> vector<8x640xf32>
    %c0_7 = arith.constant 0 : index
    %c0_8 = arith.constant 0 : index
    %6 = vector.load %arg7[%c0_7, %c0_8] : memref<1x640xf32, #tpu.memory_space<vmem>>, vector<1x640xf32>
    %7 = vector.broadcast %6 : vector<1x640xf32> to vector<8x640xf32>
    %8 = arith.addf %5, %7 : vector<8x640xf32>
    %c0_9 = arith.constant 0 : index
    %c0_10 = arith.constant 0 : index
    %9 = vector.load %arg1[%c0_9, %c0_10] : memref<8x8xf32, #tpu.memory_space<vmem>>, vector<8x8xf32>
    %10 = arith.truncf %9 : vector<8x8xf32> to vector<8x8xbf16>
    %c0_11 = arith.constant 0 : index
    %c0_12 = arith.constant 0 : index
    %11 = vector.load %arg6[%c0_11, %c0_12] : memref<8x512xbf16, #tpu.memory_space<vmem>>, vector<8x512xbf16>
    %cst_13 = arith.constant dense<0.000000e+00> : vector<8x512xf32>
    %12 = tpu.matmul %10, %11, %cst_13 {dimension_numbers = #tpu.dot_dimension_numbers<[1], [0], [0], [1], [0, 0, 1, 1], [], []>} : vector<8x8xbf16>, vector<8x512xbf16>, vector<8x512xf32> -> vector<8x512xf32>
    %13 = vector.extract_strided_slice %8 {offsets = [0, 0], sizes = [8, 128], strides = [1, 1]} : vector<8x640xf32> to vector<8x128xf32>
    %c0_14 = arith.constant 0 : index
    %c0_15 = arith.constant 0 : index
    %14 = vector.load %arg8[%c0_14, %c0_15] : memref<1x128xf32, #tpu.memory_space<vmem>>, vector<1x128xf32>
    %15 = vector.broadcast %2 : vector<8x1xf32> to vector<8x128xf32>
    %16 = vector.broadcast %14 : vector<1x128xf32> to vector<8x128xf32>
    %17 = arith.mulf %15, %16 : vector<8x128xf32>
    %18 = arith.addf %13, %17 : vector<8x128xf32>
    %19 = math.tanh %18 : vector<8x128xf32>
    %20 = arith.truncf %19 : vector<8x128xf32> to vector<8x128xbf16>
    %c0_16 = arith.constant 0 : index
    %c0_17 = arith.constant 0 : index
    %21 = vector.load %arg9[%c0_16, %c0_17] : memref<128x128xbf16, #tpu.memory_space<vmem>>, vector<128x128xbf16>
    %cst_18 = arith.constant dense<0.000000e+00> : vector<8x128xf32>
    %22 = tpu.matmul %20, %21, %cst_18 {dimension_numbers = #tpu.dot_dimension_numbers<[1], [0], [0], [1], [0, 0, 1, 1], [], []>} : vector<8x128xbf16>, vector<128x128xbf16>, vector<8x128xf32> -> vector<8x128xf32>
    %c0_19 = arith.constant 0 : index
    %c0_20 = arith.constant 0 : index
    %23 = vector.load %arg10[%c0_19, %c0_20] : memref<1x128xf32, #tpu.memory_space<vmem>>, vector<1x128xf32>
    %24 = vector.broadcast %23 : vector<1x128xf32> to vector<8x128xf32>
    %25 = arith.addf %22, %24 : vector<8x128xf32>
    %26 = vector.broadcast %2 : vector<8x1xf32> to vector<8x128xf32>
    %27 = arith.mulf %26, %25 : vector<8x128xf32>
    %28 = arith.addf %0, %27 : vector<8x128xf32>
    %c0_21 = arith.constant 0 : index
    %c0_22 = arith.constant 0 : index
    %29 = vector.load %arg11[%c0_21, %c0_22] : memref<8x128xf32, #tpu.memory_space<vmem>>, vector<8x128xf32>
    tpu.vector_store %arg11[%c0_21, %c0_22], %28 {strides = array<i32>} : memref<8x128xf32, #tpu.memory_space<vmem>>, vector<8x128xf32>,
    %30 = vector.extract_strided_slice %8 {offsets = [0, 128], sizes = [8, 512], strides = [1, 1]} : vector<8x640xf32> to vector<8x512xf32>
    %31 = arith.addf %30, %12 : vector<8x512xf32>
    %32 = vector.extract_strided_slice %31 {offsets = [0, 0], sizes = [8, 128], strides = [1, 1]} : vector<8x512xf32> to vector<8x128xf32>
    %33 = arith.negf %32 : vector<8x128xf32>
    %34 = math.exp %33 : vector<8x128xf32>
    %cst_23 = arith.constant 1.000000e+00 : f32
    %35 = vector.broadcast %cst_23 : f32 to vector<8x128xf32>
    %36 = arith.addf %35, %34 : vector<8x128xf32>
    %37 = arith.divf %35, %36 : vector<8x128xf32>
    %38 = vector.extract_strided_slice %31 {offsets = [0, 128], sizes = [8, 128], strides = [1, 1]} : vector<8x512xf32> to vector<8x128xf32>
    %39 = arith.negf %38 : vector<8x128xf32>
    %40 = math.exp %39 : vector<8x128xf32>
    %cst_24 = arith.constant 1.000000e+00 : f32
    %41 = vector.broadcast %cst_24 : f32 to vector<8x128xf32>
    %42 = arith.addf %41, %40 : vector<8x128xf32>
    %43 = arith.divf %41, %42 : vector<8x128xf32>
    %44 = vector.extract_strided_slice %31 {offsets = [0, 256], sizes = [8, 128], strides = [1, 1]} : vector<8x512xf32> to vector<8x128xf32>
    %45 = math.tanh %44 : vector<8x128xf32>
    %46 = vector.extract_strided_slice %31 {offsets = [0, 384], sizes = [8, 128], strides = [1, 1]} : vector<8x512xf32> to vector<8x128xf32>
    %47 = arith.negf %46 : vector<8x128xf32>
    %48 = math.exp %47 : vector<8x128xf32>
    %cst_25 = arith.constant 1.000000e+00 : f32
    %49 = vector.broadcast %cst_25 : f32 to vector<8x128xf32>
    %50 = arith.addf %49, %48 : vector<8x128xf32>
    %51 = arith.divf %49, %50 : vector<8x128xf32>
    %52 = arith.mulf %43, %1 : vector<8x128xf32>
    %53 = arith.mulf %37, %45 : vector<8x128xf32>
    %54 = arith.addf %52, %53 : vector<8x128xf32>
    %c0_26 = arith.constant 0 : index
    %c0_27 = arith.constant 0 : index
    %55 = vector.load %arg12[%c0_26, %c0_27] : memref<8x128xf32, #tpu.memory_space<vmem>>, vector<8x128xf32>
    tpu.vector_store %arg12[%c0_26, %c0_27], %54 {strides = array<i32>} : memref<8x128xf32, #tpu.memory_space<vmem>>, vector<8x128xf32>,
    %56 = math.tanh %54 : vector<8x128xf32>
    %57 = arith.mulf %51, %56 : vector<8x128xf32>
    %c0_28 = arith.constant 0 : index
    %c0_29 = arith.constant 0 : index
    %58 = vector.load %arg13[%c0_28, %c0_29] : memref<8x128xf32, #tpu.memory_space<vmem>>, vector<8x128xf32>
    tpu.vector_store %arg13[%c0_28, %c0_29], %57 {strides = array<i32>} : memref<8x128xf32, #tpu.memory_space<vmem>>, vector<8x128xf32>,
    return
  }
  func.func @transform_0(%arg0: i32) -> (i32, i32) {
    %c0_i32 = arith.constant 0 : i32
    %c0_i32_0 = arith.constant 0 : i32
    return %arg0, %c0_i32 : i32, i32
  }
  func.func @transform_1(%arg0: i32) -> (i32, i32) {
    %c0_i32 = arith.constant 0 : i32
    %c0_i32_0 = arith.constant 0 : i32
    return %arg0, %c0_i32 : i32, i32
  }
  func.func @transform_2(%arg0: i32) -> (i32, i32) {
    %c0_i32 = arith.constant 0 : i32
    %c0_i32_0 = arith.constant 0 : i32
    return %arg0, %c0_i32 : i32, i32
  }
  func.func @transform_3(%arg0: i32) -> (i32, i32) {
    %c0_i32 = arith.constant 0 : i32
    %c0_i32_0 = arith.constant 0 : i32
    return %arg0, %c0_i32 : i32, i32
  }
  func.func @transform_4(%arg0: i32) -> (i32, i32) {
    %c0_i32 = arith.constant 0 : i32
    %c0_i32_0 = arith.constant 0 : i32
    %c0_i32_1 = arith.constant 0 : i32
    return %c0_i32, %c0_i32_0 : i32, i32
  }
  func.func @transform_5(%arg0: i32) -> (i32, i32) {
    %c0_i32 = arith.constant 0 : i32
    %c0_i32_0 = arith.constant 0 : i32
    %c0_i32_1 = arith.constant 0 : i32
    return %c0_i32, %c0_i32_0 : i32, i32
  }
  func.func @transform_6(%arg0: i32) -> (i32, i32) {
    %c0_i32 = arith.constant 0 : i32
    %c0_i32_0 = arith.constant 0 : i32
    %c0_i32_1 = arith.constant 0 : i32
    return %c0_i32, %c0_i32_0 : i32, i32
  }
  func.func @transform_7(%arg0: i32) -> (i32, i32) {
    %c0_i32 = arith.constant 0 : i32
    %c0_i32_0 = arith.constant 0 : i32
    %c0_i32_1 = arith.constant 0 : i32
    return %c0_i32, %c0_i32_0 : i32, i32
  }
  func.func @transform_8(%arg0: i32) -> (i32, i32) {
    %c0_i32 = arith.constant 0 : i32
    %c0_i32_0 = arith.constant 0 : i32
    %c0_i32_1 = arith.constant 0 : i32
    return %c0_i32, %c0_i32_0 : i32, i32
  }
  func.func @transform_9(%arg0: i32) -> (i32, i32) {
    %c0_i32 = arith.constant 0 : i32
    %c0_i32_0 = arith.constant 0 : i32
    %c0_i32_1 = arith.constant 0 : i32
    return %c0_i32, %c0_i32_0 : i32, i32
  }
  func.func @transform_10(%arg0: i32) -> (i32, i32) {
    %c0_i32 = arith.constant 0 : i32
    %c0_i32_0 = arith.constant 0 : i32
    return %arg0, %c0_i32 : i32, i32
  }
  func.func @transform_11(%arg0: i32) -> (i32, i32) {
    %c0_i32 = arith.constant 0 : i32
    %c0_i32_0 = arith.constant 0 : i32
    return %arg0, %c0_i32 : i32, i32
  }
  func.func @transform_12(%arg0: i32) -> (i32, i32) {
    %c0_i32 = arith.constant 0 : i32
    %c0_i32_0 = arith.constant 0 : i32
    return %arg0, %c0_i32 : i32, i32
  }
}

</mosaic_0001>

<bundles_post_ra>
// kernel: continuous_lstm_forward.1
= control target key start
LH: loop header
LB: loop body
LE: loop exit
PB: predicated region body
PF: predicated region fallthrough
CT: control target
= control target key end

     0   :  { %18 = vsyncpa [#allocation3], 0  ;;  %s1387_s0 = inlined_call_operand.hbm [shape: f32[8,8], index: 0, kind: input, shape index: {}]   ;;  %s1388_s1 = inlined_call_operand.hbm [shape: f32[8,128], index: 1, kind: input, shape index: {}]   ;;  %s1389_s2 = inlined_call_operand.hbm [shape: f32[8,128], index: 2, kind: input, shape index: {}]   ;;  %s1390_s3 = inlined_call_operand.vmem [shape: f32[8,1], index: 3, kind: input, shape index: {}]   ;;  %s1391_s4 = inlined_call_operand.hbm [shape: bf16[128,640], index: 4, kind: input, shape index: {}]   ;;  %s1392_s5 = inlined_call_operand.vmem [shape: bf16[8,512], index: 5, kind: input, shape index: {}]   ;;  %s1393_s6 = inlined_call_operand.vmem [shape: f32[1,640], index: 6, kind: input, shape index: {}]   ;;  %s1394_s7 = inlined_call_operand.vmem [shape: f32[1,128], index: 7, kind: input, shape index: {}]   ;;  %s1395_s8 = inlined_call_operand.hbm [shape: bf16[128,128], index: 8, kind: input, shape index: {}]   ;;  %s1396_s9 = inlined_call_operand.vmem [shape: f32[1,128], index: 9, kind: input, shape index: {}]   ;;  %s1397_s10 = inlined_call_operand.hbm [shape: f32[8,128], index: 10, kind: output, shape index: {0}]   ;;  %s1398_s11 = inlined_call_operand.hbm [shape: f32[8,128], index: 11, kind: output, shape index: {1}]   ;;  %s1399_s12 = inlined_call_operand.hbm [shape: f32[8,128], index: 12, kind: output, shape index: {2}]  }
   0x1   :  { %19 = vsyncpa [#allocation6], 0 }
   0x2   :  { %20 = vsyncpa [#allocation9], 0 }
   0x3   :  { %21 = vsyncpa [#allocation4], 0 }
   0x4   :  { %22 = vsyncpa [#allocation13], 0  ;;  %s1220_s21 = smov [#allocation5]   ;;  %s1221_s23 = smov [#allocation8]  }
   0x5   :  { %s39_s22 = sshll.u32 %s1220_s21, 4  ;;  %s60_s24 = sshll.u32 %s1221_s23, 4  ;;  %s40_s22 = int_to_ptr.vmem [resolvable:$true] %s39_s22  ;;  %s61_s24 = int_to_ptr.vmem [resolvable:$true] %s60_s24 }
   0x6   :  { %s1058_s25 = scalar_lea.vmem %s40_s22, 128  ;;  %p1063_p1 = scmp.lt.s32.totalorder %s40_s22, %s40_s22 }
   0x7   :  { %p1059_p0 = scmp.ne.s32.totalorder %s40_s22, %s1058_s25  ;;  %p1064_p2 = scmp.lt.s32.totalorder %s1058_s25, %s1058_s25 }
   0x9   :  { %p1065_p3 = por %p1064_p2, %p1063_p1 }
   0xb   :  { %p1066_p4 = pnand %p1065_p3, %p1059_p0 }
   0xd   :  { %1069 = shalt.err (!%p1066_p4)
}
   0xe   :  { %42 = dma.hbm_to_vmem [thread:$0]  %s1388_s1, 128, %s40_s22, [#allocation6]  }
   0xf   :  { %s1078_s28 = scalar_lea.vmem %s61_s24, 5120  ;;  %p1083_p6 = scmp.lt.s32.totalorder %s61_s24, %s61_s24 }
  0x10   :  { %p1079_p5 = scmp.ne.s32.totalorder %s61_s24, %s1078_s28  ;;  %p1084_p7 = scmp.lt.s32.totalorder %s1078_s28, %s1078_s28 }
  0x12   :  { %p1085_p8 = por %p1084_p7, %p1083_p6 }
  0x14   :  { %p1086_p9 = pnand %p1085_p8, %p1079_p5 }
  0x16   :  { %1089 = shalt.err (!%p1086_p9)
}
  0x17   :  { %s1222_s29 = smov 320   ;;  %s1223_s30 = smov 20  }
  0x18   :  { %66 = dma.hbm_to_vmem [thread:$0]  %s1391_s4, 5120, %s61_s24, [#allocation9], %s1222_s29, %s1222_s29, %s1223_s30  }
  0x19   :  { %s1224_s15 = smov [#allocation2]   ;;  %s1225_s17 = smov [#allocation7]  }
  0x1a   :  { %s29_s16 = sshll.u32 %s1224_s15, 4  ;;  %s49_s18 = sshll.u32 %s1225_s17, 4  ;;  %s30_s16 = int_to_ptr.vmem [resolvable:$true] %s29_s16  ;;  %s50_s18 = int_to_ptr.vmem [resolvable:$true] %s49_s18 }
  0x1b   :  { %s1098_s1 = scalar_lea.vmem %s30_s16, 128  ;;  %p1103_p11 = scmp.lt.s32.totalorder %s30_s16, %s30_s16 }
  0x1c   :  { %p1099_p10 = scmp.ne.s32.totalorder %s30_s16, %s1098_s1  ;;  %p1104_p12 = scmp.lt.s32.totalorder %s1098_s1, %s1098_s1 }
  0x1e   :  { %p1105_p13 = por %p1104_p12, %p1103_p11 }
  0x20   :  { %p1106_p0 = pnand %p1105_p13, %p1099_p10 }
  0x22   :  { %1109 = shalt.err (!%p1106_p0)
}
  0x23   :  { %32 = dma.hbm_to_vmem [thread:$0]  %s1387_s0, 128, %s30_s16, [#allocation3]  }
  0x24   :  { %s1118_s21 = scalar_lea.vmem %s50_s18, 128  ;;  %p1123_p2 = scmp.lt.s32.totalorder %s50_s18, %s50_s18 }
  0x25   :  { %p1119_p1 = scmp.ne.s32.totalorder %s50_s18, %s1118_s21  ;;  %p1124_p3 = scmp.lt.s32.totalorder %s1118_s21, %s1118_s21 }
  0x27   :  { %p1125_p4 = por %p1124_p3, %p1123_p2 }
  0x29   :  { %p1126_p5 = pnand %p1125_p4, %p1119_p1 }
  0x2b   :  { %1129 = shalt.err (!%p1126_p5)
}
  0x2c   :  { %52 = dma.hbm_to_vmem [thread:$0]  %s1389_s2, 128, %s50_s18, [#allocation6]  }
  0x2d   :  { %s1226_s23 = smov [#allocation10]  }
  0x2e   :  { %s78_s24 = sshll.u32 %s1226_s23, 4  ;;  %s79_s24 = int_to_ptr.vmem [resolvable:$true] %s78_s24 }
  0x2f   :  { %s1138_s25 = scalar_lea.vmem %s79_s24, 1024  ;;  %p1143_p7 = scmp.lt.s32.totalorder %s79_s24, %s79_s24 }
  0x30   :  { %p1139_p6 = scmp.ne.s32.totalorder %s79_s24, %s1138_s25  ;;  %p1144_p8 = scmp.lt.s32.totalorder %s1138_s25, %s1138_s25 }
  0x32   :  { %p1145_p9 = por %p1144_p8, %p1143_p7 }
  0x34   :  { %p1146_p10 = pnand %p1145_p9, %p1139_p6 }
  0x36   :  { %1149 = shalt.err (!%p1146_p10)
}
  0x37   :  { %s1227_s0 = smov 64   ;;  %s1228_s26 = smov 4  }
  0x38   :  { %84 = dma.hbm_to_vmem [thread:$0]  %s1395_s8, 1024, %s79_s24, [#allocation9], %s1227_s0, %s1227_s0, %s1228_s26  }
  0x39   :  { %1210 = dma.done.wait [#allocation3], 128  }
  0x3a   :  { %1211 = vsyncadd [#allocation3], 4294967168 }
  0x3b   :  { %1212 = dma.done.wait [#allocation6], 256  }
  0x3c   :  { %1213 = vsyncadd [#allocation6], 4294967040 }
  0x3d   :  { %1214 = dma.done.wait [#allocation9], 6144  }
  0x3e   :  { %1215 = vsyncadd [#allocation9], 4294961152  ;;  %v1229_v0 = vmov 0   ;;  %v964_v1 = vld [vmem:[#allocation8 + $0x11c] ss:$20 sps:$4 sm:$0xff]   ;;  %v105_v30 = vld [vmem:[%s1390_s3] sm:$0xff]  ;;  %v157_v63 = vlaneseq }
  0x3f   :  { %422 = vmatprep.mubr.bf16.mxu0 %v1229_v0  ;;  %463 = vmatprep.mubr.bf16.mxu1 %v1229_v0  ;;  %v966_v2 = vld [vmem:[#allocation8 + $0x118] ss:$20 sps:$4 sm:$0xff]   ;;  %v967_v3 = vld [vmem:[#allocation8 + $0xf4] ss:$20 sps:$4 sm:$0xff]   ;;  %v969_v4 = vld [vmem:[#allocation8 + $0xf0] ss:$20 sps:$4 sm:$0xff]  }
  0x40   :  { %963 = vset.pattern.permute.xlu0 %v1229_v0  ;;  %390 = vmatprep.subr.bf16.mxu0 %v964_v1  ;;  %v970_v5 = vld [vmem:[#allocation8 + $0xcc] ss:$20 sps:$4 sm:$0xff]   ;;  %v972_v6 = vld [vmem:[#allocation8 + $0xc8] ss:$20 sps:$4 sm:$0xff]   ;;  %v973_v7 = vld [vmem:[#allocation8 + $0xa4] ss:$20 sps:$4 sm:$0xff]  }
  0x41   :  { %391 = vmatpush1.bf16.msra.mxu0 %v966_v2  ;;  %v975_v8 = vld [vmem:[#allocation8 + $0xa0] ss:$20 sps:$4 sm:$0xff]   ;;  %v976_v9 = vld [vmem:[#allocation8 + $0x7c] ss:$20 sps:$4 sm:$0xff]   ;;  %v978_v10 = vld [vmem:[#allocation8 + $0x78] ss:$20 sps:$4 sm:$0xff]   ;;  %628 = vperm.xlu0 %963, %v105_v30  }
  0x42   :  { %392 = vmatprep.subr.bf16.mxu0 %v967_v3  ;;  %v990_v11 = vld [vmem:[#allocation8 + $0x124] ss:$20 sps:$4 sm:$0xff]   ;;  %v992_v12 = vld [vmem:[#allocation8 + $0x120] ss:$20 sps:$4 sm:$0xff]   ;;  %v994_v14 = vld [vmem:[#allocation8 + $0xfc] ss:$20 sps:$4 sm:$0xff]  }
  0x43   :  { %v979_v13 = vld [vmem:[#allocation8 + $0x54] ss:$20 sps:$4 sm:$0xff]   ;;  %431 = vmatprep.subr.bf16.mxu1 %v990_v11  ;;  %v996_v15 = vld [vmem:[#allocation8 + $0xf8] ss:$20 sps:$4 sm:$0xff]   ;;  %v981_v16 = vld [vmem:[#allocation8 + $0x50] ss:$20 sps:$4 sm:$0xff]  }
  0x44   :  { %432 = vmatpush1.bf16.msra.mxu1 %v992_v12  ;;  %v998_v17 = vld [vmem:[#allocation8 + $0xd4] ss:$20 sps:$4 sm:$0xff]   ;;  %v982_v18 = vld [vmem:[#allocation8 + $0x2c] ss:$20 sps:$4 sm:$0xff]   ;;  %v1000_v19 = vld [vmem:[#allocation8 + $0xd0] ss:$20 sps:$4 sm:$0xff]  }
  0x45   :  { %393 = vmatpush1.bf16.msra.mxu0 %v969_v4  ;;  %433 = vmatprep.subr.bf16.mxu1 %v994_v14  ;;  %v1002_v20 = vld [vmem:[#allocation8 + $0xac] ss:$20 sps:$4 sm:$0xff]   ;;  %v984_v21 = vld [vmem:[#allocation8 + $0x28] ss:$20 sps:$4 sm:$0xff]   ;;  %v985_v22 = vld [vmem:[#allocation8 + $0x4] ss:$20 sps:$4 sm:$0xff]  }
  0x46   :  { %394 = vmatprep.subr.bf16.mxu0 %v970_v5  ;;  %v1004_v23 = vld [vmem:[#allocation8 + $0xa8] ss:$20 sps:$4 sm:$0xff]   ;;  %v1006_v24 = vld [vmem:[#allocation8 + $0x84] ss:$20 sps:$4 sm:$0xff]   ;;  %v987_v25 = vld [vmem:[#allocation8] ss:$20 sps:$4 sm:$0xff]  }
  0x47   :  { %v1318_v26 = vld [vmem:[#allocation5] sm:$0xff]  ;;  %v988_v31 = vld [vmem:[#allocation8 + $0x128] ss:$20 sps:$4 sm:$0xff]   ;;  %v1230_v32 = vmov 0.0   ;;  %v1012_v33 = vld [vmem:[#allocation8 + $0x58] ss:$20 sps:$4 sm:$0xff]  }
  0x48   :  { %434 = vmatpush1.bf16.msra.mxu1 %v996_v15  ;;  %v1008_v27 = vld [vmem:[#allocation8 + $0x80] ss:$20 sps:$4 sm:$0xff]   ;;  %v1010_v28 = vld [vmem:[#allocation8 + $0x5c] ss:$20 sps:$4 sm:$0xff]   ;;  %v1322_v29 = vpack.c.bf16 %v1318_v26, %v1318_v26  ;;  %vm1231_vm0 = vmmov 0   ;;  %vm530_vm1 = vcmask 1043456  }
  0x49   :  { %395 = vmatpush1.bf16.msra.mxu0 %v972_v6  ;;  %435 = vmatprep.subr.bf16.mxu1 %v998_v17  ;;  %v1014_v34 = vld [vmem:[#allocation8 + $0x34] ss:$20 sps:$4 sm:$0xff]   ;;  %v1016_v36 = vld [vmem:[#allocation8 + $0x30] ss:$20 sps:$4 sm:$0xff]   ;;  %v1017_v37 = vld [vmem:[#allocation8 + $0xc] ss:$20 sps:$4 sm:$0xff]  }
  0x4a   :  { %396 = vmatprep.subr.bf16.mxu0 %v973_v7  ;;  %v989_v35 = vld [vmem:[#allocation8 + $0x100] ss:$20 sps:$4 sm:$0xff]   ;;  %v993_v39 = vld [vmem:[#allocation8 + $0xd8] ss:$20 sps:$4 sm:$0xff]   ;;  %v1020_v40 = vld [vmem:[#allocation8 + $0x8] ss:$20 sps:$4 sm:$0xff]  }
  0x4b   :  { %v515_v38 = vld [vmem:[%s1392_s5 + $0x8] sm:$0xff]  ;;  %v1001_v45 = vld [vmem:[#allocation8 + $0x88] ss:$20 sps:$4 sm:$0xff]   ;;  %vm526_vm2 = vcmask 64512   ;;  %v1009_v50 = vld [vmem:[#allocation8 + $0x38] ss:$20 sps:$4 sm:$0xff]  }
  0x4c   :  { %436 = vmatpush1.bf16.msra.mxu1 %v1000_v19  ;;  %v872_v41 = vcombine.high %v515_v38, %v515_v38  ;;  %v871_v42 = vcombine.low %v515_v38, %v515_v38  ;;  %v997_v43 = vld [vmem:[#allocation8 + $0xb0] ss:$20 sps:$4 sm:$0xff]   ;;  %v512_v46 = vld [vmem:[#allocation2] sm:$0xff]  ;;  %v1005_v47 = vld [vmem:[#allocation8 + $0x60] ss:$20 sps:$4 sm:$0xff]  }
  0x4d   :  { %397 = vmatpush1.bf16.msra.mxu0 %v975_v8  ;;  %437 = vmatprep.subr.bf16.mxu1 %v1002_v20  ;;  %v1024_v48 = vld [vmem:[#allocation10 + $0x38] sm:$0xff]   ;;  %v513_v49 = vpack.c.bf16 %v512_v46, %v512_v46  ;;  %v1025_v51 = vld [vmem:[#allocation10 + $0x30] sm:$0xff]   ;;  %v514_v52 = vld [vmem:[%s1392_s5] sm:$0xff] }
  0x4e   :  { %398 = vmatprep.subr.bf16.mxu0 %v976_v9  ;;  %v538_v44 = vsel %vm530_vm1, %v871_v42, 0  ;;  %v1013_v53 = vld [vmem:[#allocation8 + $0x10] ss:$20 sps:$4 sm:$0xff]   ;;  %v870_v54 = vcombine.high %v514_v52, %v514_v52  ;;  %v869_v55 = vcombine.low %v514_v52, %v514_v52  ;;  %v1026_v56 = vld [vmem:[#allocation10 + $0x28] sm:$0xff]   ;;  %v1028_v59 = vld [vmem:[#allocation10 + $0x18] sm:$0xff]  }
  0x4f   :  { %v1027_v58 = vld [vmem:[#allocation10 + $0x20] sm:$0xff]   ;;  %v1029_v60 = vld [vmem:[#allocation10 + $0x10] sm:$0xff]   ;;  %v1030_v61 = vld [vmem:[#allocation10 + $0x8] sm:$0xff]  }
  0x50   :  { %438 = vmatpush1.bf16.msra.mxu1 %v1004_v23  ;;  %v532_v57 = vsel %vm530_vm1, %v869_v55, 0  ;;  %v1031_v62 = vld [vmem:[#allocation10] sm:$0xff]   ;;  %v155_v2 = vld [vmem:[%s1393_s6] sm:$0x1f]  ;;  %s1232_s6 = smov [#allocation12]  }
  0x51   :  { %399 = vmatpush1.bf16.msra.mxu0 %v978_v10  ;;  %439 = vmatprep.subr.bf16.mxu1 %v1006_v24  ;;  %v877_v3 = vld [vmem:[%s1394_s7] ss:$0 sm:$0xff]  ;;  %s801_s7 = sshll.u32 %s1232_s6, 4  ;;  %s802_s7 = int_to_ptr.vmem [resolvable:$true] %s801_s7 }
  0x52   :  { %400 = vmatprep.subr.bf16.mxu0 %v979_v13  ;;  %s1150_s17 = scalar_lea.vmem %s802_s7, 128  ;;  %p1155_p12 = scmp.lt.s32.totalorder %s802_s7, %s802_s7 }
  0x53   :  { %p1151_p11 = scmp.ne.s32.totalorder %s802_s7, %s1150_s17  ;;  %p1156_p13 = scmp.lt.s32.totalorder %s1150_s17, %s1150_s17 }
  0x54   :  { %440 = vmatpush1.bf16.msra.mxu1 %v1008_v27 }
  0x55   :  { %401 = vmatpush1.bf16.msra.mxu0 %v981_v16  ;;  %441 = vmatprep.subr.bf16.mxu1 %v1010_v28  ;;  %p1157_p0 = por %p1156_p13, %p1155_p12 }
  0x56   :  { %402 = vmatprep.subr.bf16.mxu0 %v982_v18 }
  0x57   :  { %p1158_p1 = pnand %p1157_p0, %p1151_p11 }
  0x58   :  { %442 = vmatpush1.bf16.msra.mxu1 %v1012_v33 }
  0x59   :  { %403 = vmatpush1.bf16.msra.mxu0 %v984_v21  ;;  %443 = vmatprep.subr.bf16.mxu1 %v1014_v34 }
  0x5a   :  { %404 = vmatprep.subr.bf16.mxu0 %v985_v22 }
  0x5c   :  { %444 = vmatpush1.bf16.msra.mxu1 %v1016_v36 }
  0x5d   :  { %405 = vmatpush1.bf16.msra.mxu0 %v987_v25  ;;  %445 = vmatprep.subr.bf16.mxu1 %v1017_v37 }
  0x5e   :  { %908 = vmatprep.subr.bf16.mxu0 %v1230_v32 }
  0x60   :  { %423 = vmatmul.mubr.bf16.vlgmr.msra.gmra.mxu0 %v1322_v29  ;;  %446 = vmatpush1.bf16.msra.mxu1 %v1020_v40 }
  0x61   :  { %909 = vmatpush3.bf16.msra.mxu0 %v988_v31  ;;  %924 = vmatprep.mubr.msk.bf16.mxu0 %vm1231_vm0, %v1230_v32 }
  0x62   :  { %910 = vmatprep.subr.bf16.mxu0 %v1230_v32  ;;  %875 = vmatprep.subr.msk.bf16.mxu1 %vm530_vm1, %v872_v41 }
  0x63   :  { %464 = vmatmul.mubr.bf16.vlgmr.msra.gmra.mxu1 %v1322_v29 }
  0x64   :  { %599 = vmatpush1.bf16.msra.mxu1 %v538_v44  ;;  %616 = vmatprep.mubr.bf16.mxu1 %v1229_v0 }
  0x65   :  { %911 = vmatpush3.bf16.msra.mxu0 %v989_v35  ;;  %928 = vmatprep.subr.bf16.mxu1 %v1230_v32 }
  0x66   :  { %912 = vmatprep.subr.bf16.mxu0 %v1230_v32 }
  0x69   :  { %913 = vmatpush3.bf16.msra.mxu0 %v993_v39 }
  0x6a   :  { %914 = vmatprep.subr.bf16.mxu0 %v1230_v32 }
  0x6b   :  { %876 = vmatmul.mubr.msk.bf16.vlgmr.msra.gmra.mxu1 %vm526_vm2, %v513_v49 }
  0x6c   :  { %929 = vmatpush3.bf16.msra.mxu1 %v1024_v48  ;;  %944 = vmatprep.mubr.msk.bf16.mxu1 %vm1231_vm0, %v1230_v32 }
  0x6d   :  { %915 = vmatpush3.bf16.msra.mxu0 %v997_v43  ;;  %930 = vmatprep.subr.bf16.mxu1 %v1230_v32 }
  0x6e   :  { %916 = vmatprep.subr.bf16.mxu0 %v1230_v32 }
  0x70   :  { %931 = vmatpush3.bf16.msra.mxu1 %v1025_v51 }
  0x71   :  { %917 = vmatpush3.bf16.msra.mxu0 %v1001_v45  ;;  %932 = vmatprep.subr.bf16.mxu1 %v1230_v32 }
  0x72   :  { %918 = vmatprep.subr.bf16.mxu0 %v1230_v32 }
  0x74   :  { %933 = vmatpush3.bf16.msra.mxu1 %v1026_v56 }
  0x75   :  { %919 = vmatpush3.bf16.msra.mxu0 %v1005_v47  ;;  %934 = vmatprep.subr.bf16.mxu1 %v1230_v32 }
  0x76   :  { %920 = vmatprep.subr.bf16.mxu0 %v1230_v32 }
  0x78   :  { %935 = vmatpush3.bf16.msra.mxu1 %v1027_v58  ;;  %v104_v58 = vld [vmem:[#allocation7] sm:$0xff] }
  0x79   :  { %921 = vmatpush3.bf16.msra.mxu0 %v1009_v50  ;;  %936 = vmatprep.subr.bf16.mxu1 %v1230_v32 }
  0x7a   :  { %922 = vmatprep.subr.bf16.mxu0 %v1230_v32 }
  0x7c   :  { %937 = vmatpush3.bf16.msra.mxu1 %v1028_v59 }
  0x7d   :  { %923 = vmatpush3.bf16.msra.mxu0 %v1013_v53  ;;  %938 = vmatprep.subr.bf16.mxu1 %v1230_v32 }
  0x7e   :  { %873 = vmatprep.subr.msk.bf16.mxu0 %vm530_vm1, %v870_v54 }
  0x80   :  { %925 = vmatmul.mubr.bf16.vlgmr.msra.gmra.mxu0 %v1322_v29  ;;  %939 = vmatpush3.bf16.msra.mxu1 %v1029_v60 }
  0x81   :  { %558 = vmatpush1.bf16.msra.mxu0 %v532_v57  ;;  %575 = vmatprep.mubr.bf16.mxu0 %v1229_v0  ;;  %v158_v0 = vshrl.u32 %v157_v63, 7 }
  0x82   :  { %940 = vmatprep.subr.bf16.mxu1 %v1230_v32 }
  0x83   :  { %v159_v1 = vsub.s32 0, %v158_v0  ;;  %v163_v23 = vsub.s32 1, %v158_v0  ;;  %v167_v24 = vsub.s32 2, %v158_v0  ;;  %v175_v33 = vsub.s32 4, %v158_v0 }
  0x84   :  { %941 = vmatpush3.bf16.msra.mxu1 %v1030_v61  ;;  %v171_v41 = vsub.s32 3, %v158_v0 }
  0x85   :  { %942 = vmatprep.subr.bf16.mxu1 %v1230_v32  ;;  %v160_v5 = vrot.slane %v155_v2, %v159_v1  ;;  %v164_v28 = vrot.slane %v155_v2, %v163_v23  ;;  %v168_v29 = vrot.slane %v155_v2, %v167_v24  ;;  %v176_v38 = vrot.slane %v155_v2, %v175_v33 }
  0x86   :  { %v172_v46 = vrot.slane %v155_v2, %v171_v41 }
  0x88   :  { %874 = vmatmul.mubr.msk.bf16.vlgmr.msra.gmra.mxu0 %vm526_vm2, %v513_v49  ;;  %943 = vmatpush3.bf16.msra.mxu1 %v1031_v62 }
  0xbc   :  { %v1370_v4 = vpop.permute.xlu0 %628 }
  0xbd   :  { %v637_v6 = vmul.f32 %v877_v3, %v1370_v4 }
 0x120   :  { %v424_v7 = vpop.f32.mrf.mxu0 }
 0x121   :  { %v425_v8 = vadd.f32 %v424_v7, %v160_v5 }
 0x122   :  { %v426_v9 = vpop.f32.mrf.mxu0 }
 0x123   :  { %v638_v10 = vadd.f32 %v637_v6, %v425_v8  ;;  %v465_v13 = vpop.f32.mrf.mxu1  ;;  %v427_v32 = vadd.f32 %v426_v9, %v164_v28 }
 0x124   :  { %v428_v11 = vpop.f32.mrf.mxu0  ;;  %v466_v34 = vadd.f32 %v465_v13, %v168_v29 }
 0x125   :  { %1032 = vtanh.f32 %v638_v10  ;;  %v467_v14 = vpop.f32.mrf.mxu1 }
 0x126   :  { %v429_v12 = vpop.f32.mrf.mxu0  ;;  %v468_v48 = vadd.f32 %v467_v14, %v172_v46 }
 0x127   :  { %v469_v15 = vpop.f32.mrf.mxu1 }
 0x129   :  { %v470_v18 = vpop.f32.mrf.mxu1 }
 0x12b   :  { %v618_v19 = vpop.f32.mrf.mxu1 }
 0x12c   :  { %v757_v50 = vadd.f32 %v618_v19, %v468_v48 }
 0x12d   :  { %v620_v20 = vpop.f32.mrf.mxu1 }
 0x12f   :  { %v622_v21 = vpop.f32.mrf.mxu1 }
 0x131   :  { %v623_v22 = vpop.f32.mrf.mxu1 }
 0x132   :  { %v1033_v16 = vpop.eup %1032 }
 0x133   :  { %v640_v17 = vpack.c.bf16 %v1033_v16, %v1033_v16 }
 0x135   :  { %945 = vmatmul.mubr.bf16.vlgmr.msra.gmra.mxu1 %v640_v17 }
 0x140   :  { %v506_v25 = vpop.f32.mrf.mxu0 }
 0x141   :  { %v507_v45 = vadd.f32 %v506_v25, %v176_v38 }
 0x142   :  { %v926_v27 = vpop.f32.mrf.mxu0 }
 0x143   :  { %v758_v47 = vadd.f32 %v620_v20, %v507_v45 }
 0x144   :  { %v509_v30 = vpop.f32.mrf.mxu0 }
 0x145   :  { %v889_v49 = vmul.f32 -1.442695, %v758_v47 }
 0x146   :  { %v927_v31 = vpop.f32.mrf.mxu0 }
 0x148   :  { %v577_v35 = vpop.f32.mrf.mxu0 }
 0x149   :  { %v755_v36 = vadd.f32 %v577_v35, %v427_v32 }
 0x14a   :  { %v579_v37 = vpop.f32.mrf.mxu0 }
 0x14b   :  { %v887_v39 = vmul.f32 -1.442695, %v755_v36  ;;  %v756_v40 = vadd.f32 %v579_v37, %v466_v34 }
 0x14c   :  { %v581_v42 = vpop.f32.mrf.mxu0 }
 0x14d   :  { %1034 = vpow2.f32 %v887_v39  ;;  %v888_v43 = vmul.f32 -1.442695, %v756_v40 }
 0x14e   :  { %v582_v44 = vpop.f32.mrf.mxu0 }
 0x14f   :  { %1036 = vpow2.f32 %v888_v43 }
 0x150   :  { %1038 = vpow2.f32 %v889_v49 }
 0x151   :  { %1040 = vtanh.f32 %v757_v50 }
 0x15a   :  { %v1035_v51 = vpop.eup %1034 }
 0x15b   :  { %v762_v52 = vadd.f32 1.0, %v1035_v51 }
 0x15c   :  { %v1037_v53 = vpop.eup %1036 }
 0x15d   :  { %1042 = vrcp.f32 %v762_v52  ;;  %v768_v54 = vadd.f32 1.0, %v1037_v53  ;;  %v1039_v55 = vpop.eup %1038 }
 0x15e   :  { %v1041_v56 = vpop.eup %1040  ;;  %v775_v59 = vadd.f32 1.0, %v1039_v55 }
 0x15f   :  { %1044 = vrcp.f32 %v768_v54 }
 0x160   :  { %1046 = vrcp.f32 %v775_v59 }
 0x16a   :  { %v1043_v57 = vpop.eup %1042 }
 0x16b   :  { %v779_v62 = vmul.f32 %v1043_v57, %v1041_v56 }
 0x16c   :  { %v1045_v60 = vpop.eup %1044 }
 0x16d   :  { %v778_v61 = vmul.f32 %v1045_v60, %v104_v58  ;;  %v1047_v0 = vpop.eup %1046 }
 0x16f   :  { %v780_v63 = vadd.f32 %v779_v62, %v778_v61 }
 0x171   :  { %781 = vst [vmem:[#allocation12] sm:$0xff] %v780_v63  ;;  %1048 = vtanh.f32 %v780_v63 }
 0x172   :  { %1161 = shalt.err (!%p1158_p1)
}
 0x173   :  { %804 = dma.vmem_to_hbm [thread:$0]  %s802_s7, 128, %s1398_s11, [#allocation13]  }
 0x174   :  { %s1233_s19 = smov [#allocation14]  }
 0x175   :  { %s811_s20 = sshll.u32 %s1233_s19, 4  ;;  %s812_s20 = int_to_ptr.vmem [resolvable:$true] %s811_s20 }
 0x176   :  { %s1170_s21 = scalar_lea.vmem %s812_s20, 128  ;;  %p1175_p3 = scmp.lt.s32.totalorder %s812_s20, %s812_s20 }
 0x177   :  { %p1171_p2 = scmp.ne.s32.totalorder %s812_s20, %s1170_s21  ;;  %p1176_p4 = scmp.lt.s32.totalorder %s1170_s21, %s1170_s21 }
 0x179   :  { %p1177_p5 = por %p1176_p4, %p1175_p3 }
 0x17b   :  { %p1178_p6 = pnand %p1177_p5, %p1171_p2 }
 0x17e   :  { %v1049_v1 = vpop.eup %1048 }
 0x17f   :  { %v783_v2 = vmul.f32 %v1049_v1, %v1047_v0 }
 0x181   :  { %784 = vst [vmem:[#allocation14] sm:$0xff] %v783_v2 }
 0x182   :  { %1181 = shalt.err (!%p1178_p6)
}
 0x183   :  { %814 = dma.vmem_to_hbm [thread:$0]  %s812_s20, 128, %s1399_s12, [#allocation13]   ;;  %v878_v3 = vld [vmem:[%s1396_s9] ss:$0 sm:$0xff] }
 0x184   :  { %s1234_s11 = smov [#allocation11]  }
 0x185   :  { %s791_s25 = sshll.u32 %s1234_s11, 4  ;;  %s792_s25 = int_to_ptr.vmem [resolvable:$true] %s791_s25 }
 0x186   :  { %s1190_s0 = scalar_lea.vmem %s792_s25, 128  ;;  %p1195_p8 = scmp.lt.s32.totalorder %s792_s25, %s792_s25 }
 0x187   :  { %p1191_p7 = scmp.ne.s32.totalorder %s792_s25, %s1190_s0  ;;  %p1196_p9 = scmp.lt.s32.totalorder %s1190_s0, %s1190_s0 }
 0x189   :  { %p1197_p10 = por %p1196_p9, %p1195_p8 }
 0x18b   :  { %p1198_p11 = pnand %p1197_p10, %p1191_p7 }
 0x1f5   :  { %v746_v5 = vpop.f32.mrf.mxu1 }
 0x1f6   :  { %v747_v6 = vadd.f32 %v878_v3, %v746_v5 }
 0x1f7   :  { %v946_v7 = vpop.f32.mrf.mxu1 }
 0x1f8   :  { %v752_v8 = vmul.f32 %v747_v6, %v1370_v4 }
 0x1f9   :  { %v749_v9 = vpop.f32.mrf.mxu1 }
 0x1fa   :  { %v753_v10 = vadd.f32 %v752_v8, %v1318_v26 }
 0x1fb   :  { %v947_v11 = vpop.f32.mrf.mxu1 }
 0x1fc   :  { %754 = vst [vmem:[#allocation11] sm:$0xff] %v753_v10 }
 0x1fd   :  { %1201 = shalt.err (!%p1198_p11)
}
 0x1fe   :  { %794 = dma.vmem_to_hbm [thread:$0]  %s792_s25, 128, %s1397_s10, [#allocation4]  }
 0x1ff   :  { %1216 = dma.done.wait [#allocation4], 128  }
 0x200   :  { %1217 = vsyncadd [#allocation4], 4294967168 }
 0x201   :  { %1218 = dma.done.wait [#allocation13], 256  }
 0x202   :  { %1219 = vsyncadd [#allocation13], 4294967040 }
 0x203   :  { %824 = vsyncpa [#allocation3], 1 }
 0x204   :  { %825 = vsyncpa [#allocation6], 1 }
 0x205   :  { %826 = vsyncpa [#allocation9], 1 }
 0x206   :  { %827 = vsyncpa [#allocation4], 1 }
 0x207   :  { %828 = vsyncpa [#allocation13], 1 }

</bundles_post_ra>
